<compile_context>
chip_gen: v5e
topology: v5e:2x2
jax: 0.10.0
libtpu: 0.0.40
codegen_flags: <defaults>
</compile_context>

<pallas_src>
import functools

import jax
import jax.numpy as jnp
from jax.experimental import pallas as pl
from jax.experimental.pallas import tpu as pltpu

HIDDEN = 24
LANES = 128
OUT_LANES = 8          # >= action_size; full last dim of the output buffer


def _round_up(n, m):
    return (n + m - 1) // m * m


def _grid_steps():
    # v7x has 2 TensorCores per chip -> keep 2 "parallel" grid steps so the
    # batch shards across both; single-core v5e/v6e get a 1-step grid
    # (minimum per-step overhead). Falls back to 1 on unknown backends.
    try:
        kind = jax.devices()[0].device_kind.lower()
        if "v7" in kind or "7x" in kind:
            return 2
    except Exception:
        pass
    return 1


# ---------------------------------------------------------------------------
# Parameter packing: one f32 slab, every entry starting on an 8-row boundary.
#   [r_w1 : r_w1+S]   w1 (S, H)  in lanes [0:H]
#   [r_b1]            b1 (H,)    in lanes [0:H]
#   [r_w2 : r_w2+H]   w2 (H, H)  in lanes [0:H]   (region is 128 rows)
#   [r_b2]            b2 (H,)
#   [r_w3 : r_w3+H]   w3 (H, A)  in lanes [0:A]   (region is 128 rows)
#   [r_b3]            b3 (A,)    lanes >= A hold -1e30 (baked softmax mask)
# All other entries are zero, so padded lanes/rows contribute nothing.
# ---------------------------------------------------------------------------
def pack_params(w1, b1, w2, b2, w3, b3):
    S, H = w1.shape
    A = w3.shape[1]
    assert H <= LANES and A <= OUT_LANES
    s_pad = _round_up(S, 8)

    r_w1 = 0
    r_b1 = r_w1 + s_pad
    r_w2 = r_b1 + 8
    r_b2 = r_w2 + LANES
    r_w3 = r_b2 + 8
    r_b3 = r_w3 + LANES
    n_rows = r_b3 + 8                       # multiple of 8

    slab = jnp.zeros((n_rows, LANES), jnp.float32)
    slab = slab.at[r_w1:r_w1 + S, :H].set(w1)
    slab = slab.at[r_b1, :H].set(b1)
    slab = slab.at[r_w2:r_w2 + H, :H].set(w2)
    slab = slab.at[r_b2, :H].set(b2)
    slab = slab.at[r_w3:r_w3 + H, :A].set(w3)
    # Bake the action mask into the output bias: padded lanes get -1e30, so
    # (zero w3 columns + bias) -> logit -1e30 -> exp underflows to exactly 0.
    b3_row = jnp.full((LANES,), -1e30, jnp.float32).at[:A].set(b3)
    slab = slab.at[r_b3, :].set(b3_row)

    layout = (r_w1, r_b1, r_w2, r_b2, r_w3, r_b3, s_pad)
    return slab, layout


# ---------------------------------------------------------------------------
# Kernel: one batch tile (TB rows) per grid step.
# ---------------------------------------------------------------------------
def _reinforce_kernel(x_ref, slab_ref, out_ref, *, layout):
    r_w1, r_b1, r_w2, r_b2, r_w3, r_b3, s_pad = layout

    x = x_ref[...]                                           # (TB, s_pad)

    # static, sublane-aligned views into the resident parameter slab
    w1 = slab_ref[r_w1:r_w1 + s_pad, :]                      # (s_pad, 128)
    b1 = slab_ref[r_b1:r_b1 + 1, :]                          # (1, 128)
    w2 = slab_ref[r_w2:r_w2 + LANES, :]                      # (128, 128)
    b2 = slab_ref[r_b2:r_b2 + 1, :]
    w3 = slab_ref[r_w3:r_w3 + LANES, :]                      # (128, 128)
    b3 = slab_ref[r_b3:r_b3 + 1, :]

    # fc1 + ReLU (lanes >= HIDDEN stay exactly zero)
    h1 = jnp.maximum(jnp.dot(x, w1, preferred_element_type=jnp.float32) + b1,
                     0.0)                                    # (TB, 128)
    # fc2 + ReLU
    h2 = jnp.maximum(jnp.dot(h1, w2, preferred_element_type=jnp.float32) + b2,
                     0.0)                                    # (TB, 128)
    # fc_out (mask already baked into b3)
    logits = jnp.dot(h2, w3, preferred_element_type=jnp.float32) + b3

    # Only the first OUT_LANES lanes are kept; lanes >= action_size carry the
    # baked -1e30 bias so they contribute exactly 0 probability.
    lg = logits[:, :OUT_LANES]                               # (TB, 8)
    m = jnp.max(lg, axis=-1, keepdims=True)
    e = jnp.exp(lg - m)
    denom = jnp.sum(e, axis=-1, keepdims=True)
    # exact division so each row sums to 1 (approx reciprocal broke that)
    out_ref[...] = (e / denom).astype(out_ref.dtype)


# ---------------------------------------------------------------------------
# Wrapper: minimal batch/feature padding, few big batch tiles, narrow output.
# ---------------------------------------------------------------------------
@functools.partial(jax.jit, static_argnames=("layout", "n_actions"))
def reinforce_forward(x, slab, *, layout, n_actions):
    B, S = x.shape
    s_pad = layout[-1]

    nsteps = _grid_steps()                       # 1 on v5e/v6e, 2 on v7x
    b_pad = _round_up(max(B, 8), 8 * nsteps)
    tb = b_pad // nsteps                         # multiple of 8

    x_p = jnp.pad(x.astype(jnp.float32), ((0, b_pad - B), (0, s_pad - S)))

    cost = pl.CostEstimate(
        flops=2 * b_pad * (s_pad * LANES + LANES * LANES + LANES * LANES),
        transcendentals=b_pad * OUT_LANES,
        bytes_accessed=4 * (b_pad * s_pad + int(slab.size) + b_pad * OUT_LANES),
    )

    out = pl.pallas_call(
        functools.partial(_reinforce_kernel, layout=layout),
        out_shape=jax.ShapeDtypeStruct((b_pad, OUT_LANES), jnp.float32),
        grid=(nsteps,),
        in_specs=[
            pl.BlockSpec((tb, s_pad), lambda i: (i, 0)),   # batch-tiled input
            pl.BlockSpec(slab.shape, lambda i: (0, 0)),    # params: resident
        ],
        out_specs=pl.BlockSpec((tb, OUT_LANES), lambda i: (i, 0)),
        compiler_params=pltpu.CompilerParams(
            dimension_semantics=("parallel",)),
        cost_estimate=cost,
    )(x_p, slab)

    return out[:B, :n_actions]


# ---------------------------------------------------------------------------
# PyTorch-style init (uniform +-1/sqrt(fan_in)); weights returned as (in, out).
# ---------------------------------------------------------------------------
def init_params(key, state_size, action_size, hidden=HIDDEN):
    ks = jax.random.split(key, 6)

    def linear(kw, kb, fan_in, fan_out):
        bound = 1.0 / jnp.sqrt(jnp.float32(fan_in))
        w = jax.random.uniform(kw, (fan_in, fan_out), jnp.float32, -bound, bound)
        b = jax.random.uniform(kb, (fan_out,), jnp.float32, -bound, bound)
        return w, b

    w1, b1 = linear(ks[0], ks[1], state_size, hidden)
    w2, b2 = linear(ks[2], ks[3], hidden, hidden)
    w3, b3 = linear(ks[4], ks[5], hidden, action_size)
    return w1, b1, w2, b2, w3, b3


def reference_forward(x, w1, b1, w2, b2, w3, b3):
    h1 = jnp.maximum(x @ w1 + b1, 0.0)
    h2 = jnp.maximum(h1 @ w2 + b2, 0.0)
    return jax.nn.softmax(h2 @ w3 + b3, axis=1)


if __name__ == "__main__":
    # grid-world REINFORCE: state_size=15, action_size=5
    batch, state_size, action_size = 8, 15, 5

    key = jax.random.PRNGKey(0)
    k_params, k_x = jax.random.split(key)
    params = init_params(k_params, state_size, action_size)
    slab, layout = pack_params(*params)

    # small single-tile batch
    x = jax.random.normal(k_x, (batch, state_size), jnp.float32)
    policy = reinforce_forward(x, slab, layout=layout, n_actions=action_size)
    policy = jax.block_until_ready(policy)

    ref = reference_forward(x, *params)
    assert policy.shape == (batch, action_size)
    assert float(jnp.max(jnp.abs(policy - ref))) < 1e-3
    assert jnp.allclose(jnp.sum(policy, axis=1), 1.0, atol=1e-3)

    # larger "rollout batch" exercises the padded / multi-step grid path
    xb = jax.random.normal(jax.random.PRNGKey(1), (1000, state_size), jnp.float32)
    pb = reinforce_forward(xb, slab, layout=layout, n_actions=action_size)
    pb = jax.block_until_ready(pb)
    refb = reference_forward(xb, *params)
    assert pb.shape == (1000, action_size)
    assert float(jnp.max(jnp.abs(pb - refb))) < 1e-3
    assert jnp.allclose(jnp.sum(pb, axis=1), 1.0, atol=1e-3)

    print("KERNEL_OK")
</pallas_src>

<mosaic_0001>
module attributes {stable_mosaic.version = 11 : i64} {
  func.func @_reinforce_kernel(%arg0: i32, %arg1: memref<8x16xf32, #tpu.memory_space<vmem>>, %arg2: memref<296x128xf32, #tpu.memory_space<vmem>>, %arg3: memref<8x8xf32, #tpu.memory_space<vmem>>) attributes {dimension_semantics = [#tpu.dimension_semantics<parallel>], iteration_bounds = array<i64: 1>, scalar_prefetch = 0 : i64, scratch_operands = 0 : i64, tpu.core_type = #tpu.core_type<tc>, window_params = [{transform_indices = @transform_0, window_bounds = array<i64: 8, 16>}, {pipeline_mode = #tpu.pipeline_mode<synchronous>, transform_indices = @transform_1, window_bounds = array<i64: 296, 128>}, {transform_indices = @transform_2, window_bounds = array<i64: 8, 8>}]} {
    %c0 = arith.constant 0 : index
    %c0_0 = arith.constant 0 : index
    %0 = vector.load %arg1[%c0, %c0_0] : memref<8x16xf32, #tpu.memory_space<vmem>>, vector<8x16xf32>
    %c0_1 = arith.constant 0 : index
    %c0_2 = arith.constant 0 : index
    %1 = vector.load %arg2[%c0_1, %c0_2] : memref<296x128xf32, #tpu.memory_space<vmem>>, vector<16x128xf32>
    %c16 = arith.constant 16 : index
    %c0_3 = arith.constant 0 : index
    %2 = vector.load %arg2[%c16, %c0_3] : memref<296x128xf32, #tpu.memory_space<vmem>>, vector<1x128xf32>
    %c24 = arith.constant 24 : index
    %c0_4 = arith.constant 0 : index
    %3 = vector.load %arg2[%c24, %c0_4] : memref<296x128xf32, #tpu.memory_space<vmem>>, vector<128x128xf32>
    %c152 = arith.constant 152 : index
    %c0_5 = arith.constant 0 : index
    %4 = vector.load %arg2[%c152, %c0_5] : memref<296x128xf32, #tpu.memory_space<vmem>>, vector<1x128xf32>
    %c160 = arith.constant 160 : index
    %c0_6 = arith.constant 0 : index
    %5 = vector.load %arg2[%c160, %c0_6] : memref<296x128xf32, #tpu.memory_space<vmem>>, vector<128x128xf32>
    %c288 = arith.constant 288 : index
    %c0_7 = arith.constant 0 : index
    %6 = vector.load %arg2[%c288, %c0_7] : memref<296x128xf32, #tpu.memory_space<vmem>>, vector<1x128xf32>
    %cst = arith.constant dense<0.000000e+00> : vector<8x128xf32>
    %7 = tpu.matmul %0, %1, %cst {dimension_numbers = #tpu.dot_dimension_numbers<[1], [0], [0], [1], [0, 0, 1, 1], [], []>} : vector<8x16xf32>, vector<16x128xf32>, vector<8x128xf32> -> vector<8x128xf32>
    %8 = vector.broadcast %2 : vector<1x128xf32> to vector<8x128xf32>
    %9 = arith.addf %7, %8 : vector<8x128xf32>
    %cst_8 = arith.constant 0.000000e+00 : f32
    %10 = vector.broadcast %cst_8 : f32 to vector<8x128xf32>
    %11 = arith.maximumf %9, %10 : vector<8x128xf32>
    %cst_9 = arith.constant dense<0.000000e+00> : vector<8x128xf32>
    %12 = tpu.matmul %11, %3, %cst_9 {dimension_numbers = #tpu.dot_dimension_numbers<[1], [0], [0], [1], [0, 0, 1, 1], [], []>} : vector<8x128xf32>, vector<128x128xf32>, vector<8x128xf32> -> vector<8x128xf32>
    %13 = vector.broadcast %4 : vector<1x128xf32> to vector<8x128xf32>
    %14 = arith.addf %12, %13 : vector<8x128xf32>
    %cst_10 = arith.constant 0.000000e+00 : f32
    %15 = vector.broadcast %cst_10 : f32 to vector<8x128xf32>
    %16 = arith.maximumf %14, %15 : vector<8x128xf32>
    %cst_11 = arith.constant dense<0.000000e+00> : vector<8x128xf32>
    %17 = tpu.matmul %16, %5, %cst_11 {dimension_numbers = #tpu.dot_dimension_numbers<[1], [0], [0], [1], [0, 0, 1, 1], [], []>} : vector<8x128xf32>, vector<128x128xf32>, vector<8x128xf32> -> vector<8x128xf32>
    %18 = vector.broadcast %6 : vector<1x128xf32> to vector<8x128xf32>
    %19 = arith.addf %17, %18 : vector<8x128xf32>
    %20 = vector.extract_strided_slice %19 {offsets = [0, 0], sizes = [8, 8], strides = [1, 1]} : vector<8x128xf32> to vector<8x8xf32>
    %cst_12 = arith.constant dense<0xFF800000> : vector<8xf32>
    %21 = vector.multi_reduction <maximumf>, %20, %cst_12 [1] : vector<8x8xf32> to vector<8xf32>
    %22 = vector.shape_cast %21 : vector<8xf32> to vector<8x1xf32>
    %23 = vector.broadcast %22 : vector<8x1xf32> to vector<8x8xf32>
    %24 = arith.subf %20, %23 : vector<8x8xf32>
    %25 = math.exp %24 : vector<8x8xf32>
    %cst_13 = arith.constant dense<0.000000e+00> : vector<8xf32>
    %26 = vector.multi_reduction <add>, %25, %cst_13 [1] : vector<8x8xf32> to vector<8xf32>
    %27 = vector.shape_cast %26 : vector<8xf32> to vector<8x1xf32>
    %28 = vector.broadcast %27 : vector<8x1xf32> to vector<8x8xf32>
    %29 = arith.divf %25, %28 : vector<8x8xf32>
    %c0_14 = arith.constant 0 : index
    %c0_15 = arith.constant 0 : index
    %30 = vector.load %arg3[%c0_14, %c0_15] : memref<8x8xf32, #tpu.memory_space<vmem>>, vector<8x8xf32>
    tpu.vector_store %arg3[%c0_14, %c0_15], %29 {strides = array<i32>} : memref<8x8xf32, #tpu.memory_space<vmem>>, vector<8x8xf32>,
    return
  }
  func.func @transform_0(%arg0: i32) -> (i32, i32) {
    %c0_i32 = arith.constant 0 : i32
    %c0_i32_0 = arith.constant 0 : i32
    return %arg0, %c0_i32 : i32, i32
  }
  func.func @transform_1(%arg0: i32) -> (i32, i32) {
    %c0_i32 = arith.constant 0 : i32
    %c0_i32_0 = arith.constant 0 : i32
    %c0_i32_1 = arith.constant 0 : i32
    return %c0_i32, %c0_i32_0 : i32, i32
  }
  func.func @transform_2(%arg0: i32) -> (i32, i32) {
    %c0_i32 = arith.constant 0 : i32
    %c0_i32_0 = arith.constant 0 : i32
    return %arg0, %c0_i32 : i32, i32
  }
}

</mosaic_0001>

<bundles_post_ra>
// kernel: reinforce_forward.1
= control target key start
LH: loop header
LB: loop body
LE: loop exit
PB: predicated region body
PF: predicated region fallthrough
CT: control target
= control target key end

     0   :  { %7 = vsyncpa [#allocation3], 0  ;;  %s273_s0 = inlined_call_operand.vmem [shape: f32[8,16], index: 0, kind: input, shape index: {}]   ;;  %s274_s1 = inlined_call_operand.hbm [shape: f32[296,128], index: 1, kind: input, shape index: {}]   ;;  %s275_s2 = inlined_call_operand.hbm [shape: f32[8,8], index: 2, kind: output, shape index: {}]  }
   0x1   :  { %8 = vsyncpa [#allocation4], 0  ;;  %s15_s11 = sshll.u32 %s274_s1, 4  ;;  %s242_s12 = smov [#allocation2]   ;;  %s16_s11 = int_to_ptr.hbm [resolvable:$true] %s15_s11 }
   0x2   :  { %s17_s13 = sshll.u32 %s242_s12, 4  ;;  %s243_s14 = smov 128   ;;  %s18_s13 = int_to_ptr.vmem [resolvable:$true] %s17_s13 }
   0x3   :  { %s244_s15 = smov 8  }
   0x4   :  { %23 = dma.hbm_to_vmem [thread:$0]  %s16_s11, 4736, %s18_s13, [#allocation3], %s243_s14, %s243_s14, %s244_s15  }
   0x5   :  { %238 = dma.done.wait [#allocation3], 4736  }
   0x6   :  { %239 = vsyncadd [#allocation3], 4294962560  ;;  %v30_v0 = vld [vmem:[#allocation2 + $0x8] sm:$0xff]  ;;  %v29_v1 = vld [vmem:[#allocation2] sm:$0xff]  ;;  %vm67_vm0 = vcmask 130048   ;;  %vm135_vm1 = vcmask 64512  }
   0x7   :  { %85 = vmatpush.msra.mxu0 %v30_v0  ;;  %v28_v2 = vld [vmem:[%s273_s0] sm:$0xff]  ;;  %v47_v3 = vld [vmem:[#allocation2 + $0x90] sm:$0xff]  ;;  %v46_v4 = vld [vmem:[#allocation2 + $0x88] sm:$0xff]  ;;  %s245_s0 = smov [#allocation5]   ;;  %s168_s20 = sshll.u32 %s275_s2, 4  ;;  %s169_s20 = int_to_ptr.hbm [resolvable:$true] %s168_s20 }
   0x8   :  { %93 = vmatpush.msra.mxu1 %v47_v3  ;;  %v45_v5 = vld [vmem:[#allocation2 + $0x80] sm:$0xff]  ;;  %v44_v6 = vld [vmem:[#allocation2 + $0x78] sm:$0xff]  ;;  %v43_v7 = vld [vmem:[#allocation2 + $0x70] sm:$0xff]  ;;  %s166_s1 = sshll.u32 %s245_s0, 4  ;;  %s167_s1 = int_to_ptr.vmem [resolvable:$true] %s166_s1 }
   0x9   :  { %86 = vmatpush.msra.mxu0 %v29_v1  ;;  %v42_v8 = vld [vmem:[#allocation2 + $0x68] sm:$0xff]  ;;  %v41_v9 = vld [vmem:[#allocation2 + $0x60] sm:$0xff]  ;;  %v40_v10 = vld [vmem:[#allocation2 + $0x58] sm:$0xff] }
   0xa   :  { %178 = vmatmul.msk.f32.vlgmr.msra.gmra.mxu0 %vm67_vm0, %v28_v2  ;;  %94 = vmatpush.msra.mxu1 %v46_v4  ;;  %v39_v11 = vld [vmem:[#allocation2 + $0x50] sm:$0xff]  ;;  %v38_v12 = vld [vmem:[#allocation2 + $0x48] sm:$0xff]  ;;  %v37_v13 = vld [vmem:[#allocation2 + $0x40] sm:$0xff] }
   0xb   :  { %v36_v14 = vld [vmem:[#allocation2 + $0x38] sm:$0xff]  ;;  %v35_v15 = vld [vmem:[#allocation2 + $0x30] sm:$0xff]  ;;  %v34_v16 = vld [vmem:[#allocation2 + $0x28] sm:$0xff] }
   0xc   :  { %95 = vmatpush.msra.mxu1 %v45_v5  ;;  %v33_v17 = vld [vmem:[#allocation2 + $0x20] sm:$0xff]  ;;  %v32_v18 = vld [vmem:[#allocation2 + $0x18] sm:$0xff]  ;;  %v63_v20 = vld [vmem:[#allocation2 + $0x110] sm:$0xff] }
   0xd   :  { %v64_v19 = vld [vmem:[#allocation2 + $0x118] sm:$0xff]  ;;  %v62_v21 = vld [vmem:[#allocation2 + $0x108] sm:$0xff]  ;;  %v61_v22 = vld [vmem:[#allocation2 + $0x100] sm:$0xff] }
   0xe   :  { %96 = vmatpush.msra.mxu1 %v44_v6  ;;  %115 = vmatpush.msra.mxu2 %v64_v19  ;;  %v60_v23 = vld [vmem:[#allocation2 + $0xf8] sm:$0xff]  ;;  %v59_v24 = vld [vmem:[#allocation2 + $0xf0] sm:$0xff]  ;;  %v58_v25 = vld [vmem:[#allocation2 + $0xe8] sm:$0xff] }
   0xf   :  { %v57_v26 = vld [vmem:[#allocation2 + $0xe0] sm:$0xff]  ;;  %v56_v27 = vld [vmem:[#allocation2 + $0xd8] sm:$0xff]  ;;  %v55_v28 = vld [vmem:[#allocation2 + $0xd0] sm:$0xff] }
  0x10   :  { %97 = vmatpush.msra.mxu1 %v43_v7  ;;  %116 = vmatpush.msra.mxu2 %v63_v20  ;;  %v54_v29 = vld [vmem:[#allocation2 + $0xc8] sm:$0xff]  ;;  %v53_v30 = vld [vmem:[#allocation2 + $0xc0] sm:$0xff]  ;;  %v52_v31 = vld [vmem:[#allocation2 + $0xb8] sm:$0xff] }
  0x11   :  { %v183_v32 = vld [vmem:[#allocation2 + $0x10] ss:$0 sm:$0xff]  ;;  %v50_v37 = vld [vmem:[#allocation2 + $0xa8] sm:$0xff]  ;;  %v49_v38 = vld [vmem:[#allocation2 + $0xa0] sm:$0xff] }
  0x12   :  { %98 = vmatpush.msra.mxu1 %v42_v8  ;;  %117 = vmatpush.msra.mxu2 %v62_v21  ;;  %v51_v36 = vld [vmem:[#allocation2 + $0xb0] sm:$0xff]  ;;  %v184_v39 = vld [vmem:[#allocation2 + $0x98] ss:$0 sm:$0xff]  ;;  %v185_v43 = vld [vmem:[#allocation2 + $0x120] ss:$0 sm:$0xff] }
  0x14   :  { %99 = vmatpush.msra.mxu1 %v41_v9  ;;  %118 = vmatpush.msra.mxu2 %v61_v22 }
  0x16   :  { %100 = vmatpush.msra.mxu1 %v40_v10  ;;  %119 = vmatpush.msra.mxu2 %v60_v23 }
  0x18   :  { %101 = vmatpush.msra.mxu1 %v39_v11  ;;  %120 = vmatpush.msra.mxu2 %v59_v24 }
  0x1a   :  { %102 = vmatpush.msra.mxu1 %v38_v12  ;;  %121 = vmatpush.msra.mxu2 %v58_v25 }
  0x1c   :  { %103 = vmatpush.msra.mxu1 %v37_v13  ;;  %122 = vmatpush.msra.mxu2 %v57_v26 }
  0x1e   :  { %104 = vmatpush.msra.mxu1 %v36_v14  ;;  %123 = vmatpush.msra.mxu2 %v56_v27 }
  0x20   :  { %105 = vmatpush.msra.mxu1 %v35_v15  ;;  %124 = vmatpush.msra.mxu2 %v55_v28 }
  0x22   :  { %106 = vmatpush.msra.mxu1 %v34_v16  ;;  %125 = vmatpush.msra.mxu2 %v54_v29 }
  0x24   :  { %107 = vmatpush.msra.mxu1 %v33_v17  ;;  %126 = vmatpush.msra.mxu2 %v53_v30 }
  0x26   :  { %108 = vmatpush.msra.mxu1 %v32_v18  ;;  %127 = vmatpush.msra.mxu2 %v52_v31 }
  0x28   :  { %128 = vmatpush.msra.mxu2 %v51_v36 }
  0x2a   :  { %129 = vmatpush.msra.mxu2 %v50_v37 }
  0x2c   :  { %130 = vmatpush.msra.mxu2 %v49_v38 }
  0x87   :  { %v88_v33 = vpop.f32.mrf.mxu0 }
  0x88   :  { %v89_v34 = vadd.f32 %v183_v32, %v88_v33 }
  0x8a   :  { %v91_v35 = vmax.f32 %v89_v34, 0.0 }
  0x8c   :  { %109 = vmatmul.f32.vlgmr.msra.gmra.mxu1 %v91_v35 }
 0x109   :  { %v110_v40 = vpop.f32.mrf.mxu1 }
 0x10a   :  { %v111_v41 = vadd.f32 %v184_v39, %v110_v40 }
 0x10c   :  { %v113_v42 = vmax.f32 %v111_v41, 0.0 }
 0x10e   :  { %131 = vmatmul.f32.vlgmr.msra.gmra.mxu2 %v113_v42 }
 0x191   :  { %v132_v44 = vpop.f32.mrf.mxu2 }
 0x192   :  { %v133_v45 = vadd.f32 %v185_v43, %v132_v44 }
 0x194   :  { %v136_v46 = vsel %vm135_vm1, %v133_v45, -inf }
 0x195   :  { %137 = vmax.xlane.f32.xlu0 %v136_v46 }
 0x208   :  { %v138_v47 = vpop.xlane.xlu0 %137 }
 0x209   :  { %v139_v48 = vsub.f32 %v133_v45, %v138_v47 }
 0x20b   :  { %v140_v49 = vmul.f32 1.442695, %v139_v48 }
 0x20d   :  { %186 = vpow2.f32 %v140_v49 }
 0x213   :  { %v187_v50 = vpop.eup %186 }
 0x214   :  { %v142_v51 = vsel %vm135_vm1, %v187_v50, 0.0 }
 0x215   :  { %143 = vadd.xlane.f32.xlu0 %v142_v51 }
 0x288   :  { %v144_v52 = vpop.xlane.xlu0 %143 }
 0x289   :  { %188 = vrcp.f32 %v144_v52  ;;  %v156_v56 = vand.u32 2147483648, %v144_v52  ;;  %v154_v58 = vand.u32 2147483647, %v144_v52  ;;  %vm150_vm3 = vweird.f32 %v144_v52 }
 0x28b   :  { %v157_v60 = vor.u32 1.1754944e-38, %v156_v56  ;;  %vm155_vm5 = vcmp.eq.f32.partialorder %v154_v58, 8.507059e+37 }
 0x28f   :  { %v189_v53 = vpop.eup %188 }
 0x290   :  { %v146_v54 = vmul.f32 %v189_v53, %v144_v52  ;;  %vm151_vm2 = vweird.f32 %v189_v53 }
 0x291   :  { %vm152_vm4 = vmor %vm150_vm3, %vm151_vm2 }
 0x292   :  { %v147_v55 = vsub.f32 1.0, %v146_v54 }
 0x294   :  { %v148_v57 = vmul.f32 %v189_v53, %v147_v55 }
 0x296   :  { %v149_v59 = vadd.f32 %v189_v53, %v148_v57 }
 0x298   :  { %v153_v61 = vsel %vm152_vm4, %v189_v53, %v149_v59 }
 0x299   :  { %v158_v62 = vsel %vm155_vm5, %v157_v60, %v153_v61 }
 0x29a   :  { %v159_v63 = vmul.f32 %v187_v50, %v158_v62 }
 0x29c   :  { %160 = vst.msk [vmem:[#allocation5] sm:$0xff] %vm135_vm1, %v159_v63 }
 0x29d   :  { %171 = dma.vmem_to_hbm [thread:$0]  %s167_s1, 128, %s169_s20, [#allocation4]  }
 0x29e   :  { %240 = dma.done.wait [#allocation4], 128  }
 0x29f   :  { %241 = vsyncadd [#allocation4], 4294967168 }
 0x2a0   :  { %176 = vsyncpa [#allocation3], 1 }
 0x2a1   :  { %177 = vsyncpa [#allocation4], 1 }

</bundles_post_ra>
